<compile_context>
chip_gen: v6e
topology: v6e:2x2x1
jax: 0.10.0
libtpu: 0.0.40
codegen_flags: <defaults>
</compile_context>

<pallas_src>
import jax
import jax.numpy as jnp
from jax import lax
from jax.experimental import pallas as pl
from jax.experimental.pallas import tpu as pltpu


def _log_sigmoid(x):
    # numerically stable log(sigmoid(x)) = min(x, 0) - log1p(exp(-|x|))
    return jnp.minimum(x, 0.0) - jnp.log1p(jnp.exp(-jnp.abs(x)))


def _round_up(x, m):
    return ((x + m - 1) // m) * m


def _make_sgns_kernel(batch, num_neg, tile):
    """Kernel factory; batch (B), num_neg (K) and tile (TB) are static ints."""
    B, K, TB = batch, num_neg, tile

    def kernel(cw_ref, xw_ref, nw_ref,        # SMEM scalar-prefetch indices
               in_tab, out_tab,               # HBM (ANY) embedding tables
               out_ref,                       # (8, 128) per-tile partial loss
               cbuf, xbuf, nbuf, sem):        # VMEM gather scratch + DMA sem
        t = pl.program_id(0)
        base = t * TB

        def row_copies(i):
            """The (2 + K) row-gather DMA descriptors for tile-local row i."""
            row = base + i
            c_idx = cw_ref[row]
            x_idx = xw_ref[row]
            cps = [
                pltpu.make_async_copy(in_tab.at[pl.ds(c_idx, 1), :],
                                      cbuf.at[pl.ds(i, 1), :], sem.at[0]),
                pltpu.make_async_copy(out_tab.at[pl.ds(x_idx, 1), :],
                                      xbuf.at[pl.ds(i, 1), :], sem.at[0]),
            ]
            for k in range(K):
                n_idx = nw_ref[row * K + k]
                cps.append(pltpu.make_async_copy(
                    out_tab.at[pl.ds(n_idx, 1), :],
                    nbuf.at[pl.ds(k * TB + i, 1), :], sem.at[0]))
            return cps

        # Issue every row DMA of the tile first (all in flight together) ...
        @pl.loop(0, TB)
        def _start(i):
            for cp in row_copies(i):
                cp.start()

        # ... then drain with matched waits (one per started copy).
        @pl.loop(0, TB)
        def _wait(i):
            for cp in row_copies(i):
                cp.wait()

        # Dense (TB, D) compute; cast gathered rows (not whole tables) to f32.
        center = cbuf[...].astype(jnp.float32)       # (TB, D)
        context = xbuf[...].astype(jnp.float32)      # (TB, D)

        neg_sum = nbuf[pl.ds(0, TB), :].astype(jnp.float32)
        for k in range(1, K):
            neg_sum = neg_sum + nbuf[pl.ds(k * TB, TB), :].astype(jnp.float32)

        pos_dot = jnp.sum(center * context, axis=-1, keepdims=True)  # (TB, 1)
        neg_dot = jnp.sum(center * neg_sum, axis=-1, keepdims=True)  # (TB, 1)
        per_ex = -(_log_sigmoid(pos_dot) + _log_sigmoid(-neg_dot))   # (TB, 1)

        # Mask rows padded beyond the real batch size.
        valid = (base + lax.broadcasted_iota(jnp.int32, (TB, 1), 0)) < B
        tile_loss = jnp.sum(jnp.where(valid, per_ex, 0.0))

        # Lane-dense per-tile output block: partial loss at [0, 0], zeros else.
        r = lax.broadcasted_iota(jnp.int32, (8, 128), 0)
        c = lax.broadcasted_iota(jnp.int32, (8, 128), 1)
        out_ref[...] = jnp.where((r == 0) & (c == 0), tile_loss, 0.0)

    return kernel


@jax.jit
def sgns_forward(center_words, context_words, neg_context_words,
                 input_emb, output_emb):
    """Pallas forward pass of SkipGramModel. Returns scalar loss (f32)."""
    B = center_words.shape[0]
    K = neg_context_words.shape[1]
    V, D = input_emb.shape
    assert K >= 1

    in_it = jnp.dtype(input_emb.dtype).itemsize
    out_it = jnp.dtype(output_emb.dtype).itemsize

    # Batch-tile sizing: multiple of 8 sublanes, capped so the lane-padded
    # (2 + K) gather buffers stay under ~8 MiB (fits v5e 16 MiB scoped default
    # and leaves ample headroom on v7x's 64 MiB physical VMEM).
    d_pad = _round_up(D, 128)
    per_ex_bytes = d_pad * (in_it + (1 + K) * out_it)
    budget = 8 * 1024 * 1024
    tb_cap = max(8, (budget // per_ex_bytes) // 8 * 8)
    TB = int(max(8, min(256, tb_cap, _round_up(B, 8))))
    B_pad = _round_up(B, TB)
    num_tiles = B_pad // TB

    # Flattened / padded int32 index arrays for SMEM scalar prefetch.
    center_ids = jnp.pad(center_words.astype(jnp.int32).reshape(B),
                         (0, B_pad - B))
    context_ids = jnp.pad(context_words.astype(jnp.int32).reshape(B),
                          (0, B_pad - B))
    neg_ids = jnp.pad(neg_context_words.astype(jnp.int32).reshape(B * K),
                      (0, (B_pad - B) * K))

    scratch_bytes = (TB * d_pad * in_it
                     + (1 + K) * TB * d_pad * out_it
                     + 4 * 8 * 128 * 4)
    vmem_limit = int(min(64 * 1024 * 1024,
                         max(32 * 1024 * 1024, 2 * scratch_bytes)))

    grid_spec = pltpu.PrefetchScalarGridSpec(
        num_scalar_prefetch=3,
        grid=(num_tiles,),
        in_specs=[pl.BlockSpec(memory_space=pl.ANY),   # input embedding table
                  pl.BlockSpec(memory_space=pl.ANY)],  # output embedding table
        out_specs=pl.BlockSpec((8, 128), lambda t, *prefetch: (t, 0)),
        scratch_shapes=[
            pltpu.VMEM((TB, D), input_emb.dtype),       # gathered center rows
            pltpu.VMEM((TB, D), output_emb.dtype),      # gathered context rows
            pltpu.VMEM((K * TB, D), output_emb.dtype),  # gathered negative rows
            pltpu.SemaphoreType.DMA((1,)),
        ],
    )

    partials = pl.pallas_call(
        _make_sgns_kernel(B, K, TB),
        out_shape=jax.ShapeDtypeStruct((num_tiles * 8, 128), jnp.float32),
        grid_spec=grid_spec,
        compiler_params=pltpu.CompilerParams(
            dimension_semantics=("parallel",),   # independent tiles -> megacore
            vmem_limit_bytes=vmem_limit),
    )(center_ids, context_ids, neg_ids, input_emb, output_emb)

    # Non-[0,0] entries of every tile block are exact zeros.
    return jnp.sum(partials) / jnp.float32(B)


def sgns_reference(center_words, context_words, neg_context_words,
                   input_emb, output_emb):
    """Pure-JAX reference mirroring the PyTorch forward exactly."""
    emb_center = input_emb[center_words]                      # [B, D]
    emb_context = output_emb[context_words]                   # [B, D]
    emb_neg = output_emb[neg_context_words]                   # [B, K, D]
    pos_score = jax.nn.log_sigmoid(
        jnp.sum(emb_center * emb_context, axis=1))            # [B]
    neg_s = jnp.einsum('bkd,bd->bk', emb_neg, emb_center)     # [B, K]
    neg_score = jax.nn.log_sigmoid(-jnp.sum(neg_s, axis=1))   # [B]
    return -(pos_score + neg_score).mean()


if __name__ == "__main__":
    # Small synthetic shapes consistent with the module's forward.
    VOCAB = 64
    EMB_DIM = 32
    BATCH = 8
    NEG_K = 5

    key = jax.random.PRNGKey(0)
    k_in, k_c, k_ctx, k_neg, k_out2, k_c2, k_ctx2, k_neg2 = jax.random.split(key, 8)

    # Deterministic parameter init, exactly as in SkipGramModel.__init__:
    initrange = 0.5 / EMB_DIM
    input_emb = jax.random.uniform(
        k_in, (VOCAB, EMB_DIM), jnp.float32,
        minval=-initrange, maxval=initrange)
    output_emb = jnp.zeros((VOCAB, EMB_DIM), jnp.float32)  # uniform_(-0, 0)

    center_words = jax.random.randint(k_c, (BATCH,), 0, VOCAB, jnp.int32)
    context_words = jax.random.randint(k_ctx, (BATCH,), 0, VOCAB, jnp.int32)
    neg_context_words = jax.random.randint(
        k_neg, (BATCH, NEG_K), 0, VOCAB, jnp.int32)

    # 1) Module parameters as initialized (output table all zeros).
    loss = sgns_forward(center_words, context_words, neg_context_words,
                        input_emb, output_emb)
    jax.block_until_ready(loss)
    ref = sgns_reference(center_words, context_words, neg_context_words,
                         input_emb, output_emb)
    assert jnp.allclose(loss, ref, atol=1e-5, rtol=1e-5), (loss, ref)

    # 2) Non-zero output table and a batch that is NOT a multiple of the tile,
    #    exercising the gather path and the padding/masking logic.
    BATCH2 = 11
    output_emb2 = jax.random.uniform(
        k_out2, (VOCAB, EMB_DIM), jnp.float32, minval=-0.1, maxval=0.1)
    center2 = jax.random.randint(k_c2, (BATCH2,), 0, VOCAB, jnp.int32)
    context2 = jax.random.randint(k_ctx2, (BATCH2,), 0, VOCAB, jnp.int32)
    neg2 = jax.random.randint(k_neg2, (BATCH2, NEG_K), 0, VOCAB, jnp.int32)

    loss2 = sgns_forward(center2, context2, neg2, input_emb, output_emb2)
    jax.block_until_ready(loss2)
    ref2 = sgns_reference(center2, context2, neg2, input_emb, output_emb2)
    assert jnp.allclose(loss2, ref2, atol=1e-5, rtol=1e-5), (loss2, ref2)

    print("KERNEL_OK")
</pallas_src>

<mosaic_0001>
module attributes {stable_mosaic.version = 11 : i64} {
  func.func @kernel(%arg0: i32, %arg1: memref<8xi32, #tpu.memory_space<smem>>, %arg2: memref<8xi32, #tpu.memory_space<smem>>, %arg3: memref<40xi32, #tpu.memory_space<smem>>, %arg4: memref<64x32xf32, #tpu.memory_space<any>>, %arg5: memref<64x32xf32, #tpu.memory_space<any>>, %arg6: memref<8x128xf32, #tpu.memory_space<vmem>>, %arg7: memref<8x32xf32, #tpu.memory_space<vmem>>, %arg8: memref<8x32xf32, #tpu.memory_space<vmem>>, %arg9: memref<40x32xf32, #tpu.memory_space<vmem>>, %arg10: memref<1x!tpu.dma_semaphore, #tpu.memory_space<semaphore_mem>>) attributes {dimension_semantics = [#tpu.dimension_semantics<parallel>], iteration_bounds = array<i64: 1>, scalar_prefetch = 3 : i64, scratch_operands = 4 : i64, tpu.core_type = #tpu.core_type<tc>, window_params = [{}, {}, {transform_indices = @transform_2, window_bounds = array<i64: 8, 128>}]} {
    %c8_i32 = arith.constant 8 : i32
    %0 = arith.muli %arg0, %c8_i32 : i32
    %c0_i32 = arith.constant 0 : i32
    %c8_i32_0 = arith.constant 8 : i32
    %1 = arith.addi %c0_i32, %c8_i32_0 : i32
    %c1_i32 = arith.constant 1 : i32
    scf.for %arg11 = %c0_i32 to %1 step %c1_i32  : i32 {
      %c1_i32_30 = arith.constant 1 : i32
      %63 = arith.muli %arg11, %c1_i32_30 : i32
      %c0_i32_31 = arith.constant 0 : i32
      %64 = arith.addi %c0_i32_31, %63 : i32
      %65 = arith.addi %0, %64 : i32
      %66 = arith.index_cast %65 : i32 to index
      %67 = memref.load %arg1[%66] : memref<8xi32, #tpu.memory_space<smem>>
      %68 = arith.index_cast %65 : i32 to index
      %69 = memref.load %arg2[%68] : memref<8xi32, #tpu.memory_space<smem>>
      %c5_i32 = arith.constant 5 : i32
      %70 = arith.muli %65, %c5_i32 : i32
      %c0_i32_32 = arith.constant 0 : i32
      %71 = arith.addi %70, %c0_i32_32 : i32
      %72 = arith.index_cast %71 : i32 to index
      %73 = memref.load %arg3[%72] : memref<40xi32, #tpu.memory_space<smem>>
      %c0_i32_33 = arith.constant 0 : i32
      %74 = arith.addi %c0_i32_33, %64 : i32
      %c5_i32_34 = arith.constant 5 : i32
      %75 = arith.muli %65, %c5_i32_34 : i32
      %c1_i32_35 = arith.constant 1 : i32
      %76 = arith.addi %75, %c1_i32_35 : i32
      %77 = arith.index_cast %76 : i32 to index
      %78 = memref.load %arg3[%77] : memref<40xi32, #tpu.memory_space<smem>>
      %c8_i32_36 = arith.constant 8 : i32
      %79 = arith.addi %c8_i32_36, %64 : i32
      %c5_i32_37 = arith.constant 5 : i32
      %80 = arith.muli %65, %c5_i32_37 : i32
      %c2_i32 = arith.constant 2 : i32
      %81 = arith.addi %80, %c2_i32 : i32
      %82 = arith.index_cast %81 : i32 to index
      %83 = memref.load %arg3[%82] : memref<40xi32, #tpu.memory_space<smem>>
      %c16_i32 = arith.constant 16 : i32
      %84 = arith.addi %c16_i32, %64 : i32
      %c5_i32_38 = arith.constant 5 : i32
      %85 = arith.muli %65, %c5_i32_38 : i32
      %c3_i32 = arith.constant 3 : i32
      %86 = arith.addi %85, %c3_i32 : i32
      %87 = arith.index_cast %86 : i32 to index
      %88 = memref.load %arg3[%87] : memref<40xi32, #tpu.memory_space<smem>>
      %c24_i32 = arith.constant 24 : i32
      %89 = arith.addi %c24_i32, %64 : i32
      %c5_i32_39 = arith.constant 5 : i32
      %90 = arith.muli %65, %c5_i32_39 : i32
      %c4_i32 = arith.constant 4 : i32
      %91 = arith.addi %90, %c4_i32 : i32
      %92 = arith.index_cast %91 : i32 to index
      %93 = memref.load %arg3[%92] : memref<40xi32, #tpu.memory_space<smem>>
      %c32_i32 = arith.constant 32 : i32
      %94 = arith.addi %c32_i32, %64 : i32
      %c0_i32_40 = arith.constant 0 : i32
      %c0_i32_41 = arith.constant 0 : i32
      %95 = tpu.memref_slice %arg4[%67, %c0_i32_41] : memref<64x32xf32, #tpu.memory_space<any>> -> memref<1x32xf32, #tpu.memory_space<any>>
      %c0_i32_42 = arith.constant 0 : i32
      %96 = tpu.memref_slice %arg7[%64, %c0_i32_42] : memref<8x32xf32, #tpu.memory_space<vmem>> -> memref<1x32xf32, #tpu.memory_space<vmem>>
      %97 = tpu.memref_slice %arg10[%c0_i32_40] : memref<1x!tpu.dma_semaphore, #tpu.memory_space<semaphore_mem>> -> memref<1x!tpu.dma_semaphore, #tpu.memory_space<semaphore_mem>>
      %98 = tpu.memref_squeeze %97 : memref<1x!tpu.dma_semaphore, #tpu.memory_space<semaphore_mem>> -> memref<!tpu.dma_semaphore, #tpu.memory_space<semaphore_mem>>
      tpu.enqueue_dma source(%95 : memref<1x32xf32, #tpu.memory_space<any>>) target(%96 : memref<1x32xf32, #tpu.memory_space<vmem>>) target_semaphore(%98 : memref<!tpu.dma_semaphore, #tpu.memory_space<semaphore_mem>>)
      %c0_i32_43 = arith.constant 0 : i32
      %c0_i32_44 = arith.constant 0 : i32
      %99 = tpu.memref_slice %arg5[%69, %c0_i32_44] : memref<64x32xf32, #tpu.memory_space<any>> -> memref<1x32xf32, #tpu.memory_space<any>>
      %c0_i32_45 = arith.constant 0 : i32
      %100 = tpu.memref_slice %arg8[%64, %c0_i32_45] : memref<8x32xf32, #tpu.memory_space<vmem>> -> memref<1x32xf32, #tpu.memory_space<vmem>>
      %101 = tpu.memref_slice %arg10[%c0_i32_43] : memref<1x!tpu.dma_semaphore, #tpu.memory_space<semaphore_mem>> -> memref<1x!tpu.dma_semaphore, #tpu.memory_space<semaphore_mem>>
      %102 = tpu.memref_squeeze %101 : memref<1x!tpu.dma_semaphore, #tpu.memory_space<semaphore_mem>> -> memref<!tpu.dma_semaphore, #tpu.memory_space<semaphore_mem>>
      tpu.enqueue_dma source(%99 : memref<1x32xf32, #tpu.memory_space<any>>) target(%100 : memref<1x32xf32, #tpu.memory_space<vmem>>) target_semaphore(%102 : memref<!tpu.dma_semaphore, #tpu.memory_space<semaphore_mem>>)
      %c0_i32_46 = arith.constant 0 : i32
      %c0_i32_47 = arith.constant 0 : i32
      %103 = tpu.memref_slice %arg5[%73, %c0_i32_47] : memref<64x32xf32, #tpu.memory_space<any>> -> memref<1x32xf32, #tpu.memory_space<any>>
      %c0_i32_48 = arith.constant 0 : i32
      %104 = tpu.memref_slice %arg9[%74, %c0_i32_48] : memref<40x32xf32, #tpu.memory_space<vmem>> -> memref<1x32xf32, #tpu.memory_space<vmem>>
      %105 = tpu.memref_slice %arg10[%c0_i32_46] : memref<1x!tpu.dma_semaphore, #tpu.memory_space<semaphore_mem>> -> memref<1x!tpu.dma_semaphore, #tpu.memory_space<semaphore_mem>>
      %106 = tpu.memref_squeeze %105 : memref<1x!tpu.dma_semaphore, #tpu.memory_space<semaphore_mem>> -> memref<!tpu.dma_semaphore, #tpu.memory_space<semaphore_mem>>
      tpu.enqueue_dma source(%103 : memref<1x32xf32, #tpu.memory_space<any>>) target(%104 : memref<1x32xf32, #tpu.memory_space<vmem>>) target_semaphore(%106 : memref<!tpu.dma_semaphore, #tpu.memory_space<semaphore_mem>>)
      %c0_i32_49 = arith.constant 0 : i32
      %c0_i32_50 = arith.constant 0 : i32
      %107 = tpu.memref_slice %arg5[%78, %c0_i32_50] : memref<64x32xf32, #tpu.memory_space<any>> -> memref<1x32xf32, #tpu.memory_space<any>>
      %c0_i32_51 = arith.constant 0 : i32
      %108 = tpu.memref_slice %arg9[%79, %c0_i32_51] : memref<40x32xf32, #tpu.memory_space<vmem>> -> memref<1x32xf32, #tpu.memory_space<vmem>>
      %109 = tpu.memref_slice %arg10[%c0_i32_49] : memref<1x!tpu.dma_semaphore, #tpu.memory_space<semaphore_mem>> -> memref<1x!tpu.dma_semaphore, #tpu.memory_space<semaphore_mem>>
      %110 = tpu.memref_squeeze %109 : memref<1x!tpu.dma_semaphore, #tpu.memory_space<semaphore_mem>> -> memref<!tpu.dma_semaphore, #tpu.memory_space<semaphore_mem>>
      tpu.enqueue_dma source(%107 : memref<1x32xf32, #tpu.memory_space<any>>) target(%108 : memref<1x32xf32, #tpu.memory_space<vmem>>) target_semaphore(%110 : memref<!tpu.dma_semaphore, #tpu.memory_space<semaphore_mem>>)
      %c0_i32_52 = arith.constant 0 : i32
      %c0_i32_53 = arith.constant 0 : i32
      %111 = tpu.memref_slice %arg5[%83, %c0_i32_53] : memref<64x32xf32, #tpu.memory_space<any>> -> memref<1x32xf32, #tpu.memory_space<any>>
      %c0_i32_54 = arith.constant 0 : i32
      %112 = tpu.memref_slice %arg9[%84, %c0_i32_54] : memref<40x32xf32, #tpu.memory_space<vmem>> -> memref<1x32xf32, #tpu.memory_space<vmem>>
      %113 = tpu.memref_slice %arg10[%c0_i32_52] : memref<1x!tpu.dma_semaphore, #tpu.memory_space<semaphore_mem>> -> memref<1x!tpu.dma_semaphore, #tpu.memory_space<semaphore_mem>>
      %114 = tpu.memref_squeeze %113 : memref<1x!tpu.dma_semaphore, #tpu.memory_space<semaphore_mem>> -> memref<!tpu.dma_semaphore, #tpu.memory_space<semaphore_mem>>
      tpu.enqueue_dma source(%111 : memref<1x32xf32, #tpu.memory_space<any>>) target(%112 : memref<1x32xf32, #tpu.memory_space<vmem>>) target_semaphore(%114 : memref<!tpu.dma_semaphore, #tpu.memory_space<semaphore_mem>>)
      %c0_i32_55 = arith.constant 0 : i32
      %c0_i32_56 = arith.constant 0 : i32
      %115 = tpu.memref_slice %arg5[%88, %c0_i32_56] : memref<64x32xf32, #tpu.memory_space<any>> -> memref<1x32xf32, #tpu.memory_space<any>>
      %c0_i32_57 = arith.constant 0 : i32
      %116 = tpu.memref_slice %arg9[%89, %c0_i32_57] : memref<40x32xf32, #tpu.memory_space<vmem>> -> memref<1x32xf32, #tpu.memory_space<vmem>>
      %117 = tpu.memref_slice %arg10[%c0_i32_55] : memref<1x!tpu.dma_semaphore, #tpu.memory_space<semaphore_mem>> -> memref<1x!tpu.dma_semaphore, #tpu.memory_space<semaphore_mem>>
      %118 = tpu.memref_squeeze %117 : memref<1x!tpu.dma_semaphore, #tpu.memory_space<semaphore_mem>> -> memref<!tpu.dma_semaphore, #tpu.memory_space<semaphore_mem>>
      tpu.enqueue_dma source(%115 : memref<1x32xf32, #tpu.memory_space<any>>) target(%116 : memref<1x32xf32, #tpu.memory_space<vmem>>) target_semaphore(%118 : memref<!tpu.dma_semaphore, #tpu.memory_space<semaphore_mem>>)
      %c0_i32_58 = arith.constant 0 : i32
      %c0_i32_59 = arith.constant 0 : i32
      %119 = tpu.memref_slice %arg5[%93, %c0_i32_59] : memref<64x32xf32, #tpu.memory_space<any>> -> memref<1x32xf32, #tpu.memory_space<any>>
      %c0_i32_60 = arith.constant 0 : i32
      %120 = tpu.memref_slice %arg9[%94, %c0_i32_60] : memref<40x32xf32, #tpu.memory_space<vmem>> -> memref<1x32xf32, #tpu.memory_space<vmem>>
      %121 = tpu.memref_slice %arg10[%c0_i32_58] : memref<1x!tpu.dma_semaphore, #tpu.memory_space<semaphore_mem>> -> memref<1x!tpu.dma_semaphore, #tpu.memory_space<semaphore_mem>>
      %122 = tpu.memref_squeeze %121 : memref<1x!tpu.dma_semaphore, #tpu.memory_space<semaphore_mem>> -> memref<!tpu.dma_semaphore, #tpu.memory_space<semaphore_mem>>
      tpu.enqueue_dma source(%119 : memref<1x32xf32, #tpu.memory_space<any>>) target(%120 : memref<1x32xf32, #tpu.memory_space<vmem>>) target_semaphore(%122 : memref<!tpu.dma_semaphore, #tpu.memory_space<semaphore_mem>>)
    }
    %c8_i32_1 = arith.constant 8 : i32
    %c0_i32_2 = arith.constant 0 : i32
    %c8_i32_3 = arith.constant 8 : i32
    %2 = arith.addi %c0_i32_2, %c8_i32_3 : i32
    %c1_i32_4 = arith.constant 1 : i32
    scf.for %arg11 = %c0_i32_2 to %2 step %c1_i32_4  : i32 {
      %c1_i32_30 = arith.constant 1 : i32
      %63 = arith.muli %arg11, %c1_i32_30 : i32
      %c0_i32_31 = arith.constant 0 : i32
      %64 = arith.addi %c0_i32_31, %63 : i32
      %65 = arith.addi %0, %64 : i32
      %66 = arith.index_cast %65 : i32 to index
      %67 = memref.load %arg1[%66] : memref<8xi32, #tpu.memory_space<smem>>
      %68 = arith.index_cast %65 : i32 to index
      %69 = memref.load %arg2[%68] : memref<8xi32, #tpu.memory_space<smem>>
      %c5_i32 = arith.constant 5 : i32
      %70 = arith.muli %65, %c5_i32 : i32
      %c0_i32_32 = arith.constant 0 : i32
      %71 = arith.addi %70, %c0_i32_32 : i32
      %72 = arith.index_cast %71 : i32 to index
      %73 = memref.load %arg3[%72] : memref<40xi32, #tpu.memory_space<smem>>
      %c0_i32_33 = arith.constant 0 : i32
      %74 = arith.addi %c0_i32_33, %64 : i32
      %c5_i32_34 = arith.constant 5 : i32
      %75 = arith.muli %65, %c5_i32_34 : i32
      %c1_i32_35 = arith.constant 1 : i32
      %76 = arith.addi %75, %c1_i32_35 : i32
      %77 = arith.index_cast %76 : i32 to index
      %78 = memref.load %arg3[%77] : memref<40xi32, #tpu.memory_space<smem>>
      %c8_i32_36 = arith.constant 8 : i32
      %79 = arith.addi %c8_i32_36, %64 : i32
      %c5_i32_37 = arith.constant 5 : i32
      %80 = arith.muli %65, %c5_i32_37 : i32
      %c2_i32 = arith.constant 2 : i32
      %81 = arith.addi %80, %c2_i32 : i32
      %82 = arith.index_cast %81 : i32 to index
      %83 = memref.load %arg3[%82] : memref<40xi32, #tpu.memory_space<smem>>
      %c16_i32 = arith.constant 16 : i32
      %84 = arith.addi %c16_i32, %64 : i32
      %c5_i32_38 = arith.constant 5 : i32
      %85 = arith.muli %65, %c5_i32_38 : i32
      %c3_i32 = arith.constant 3 : i32
      %86 = arith.addi %85, %c3_i32 : i32
      %87 = arith.index_cast %86 : i32 to index
      %88 = memref.load %arg3[%87] : memref<40xi32, #tpu.memory_space<smem>>
      %c24_i32 = arith.constant 24 : i32
      %89 = arith.addi %c24_i32, %64 : i32
      %c5_i32_39 = arith.constant 5 : i32
      %90 = arith.muli %65, %c5_i32_39 : i32
      %c4_i32 = arith.constant 4 : i32
      %91 = arith.addi %90, %c4_i32 : i32
      %92 = arith.index_cast %91 : i32 to index
      %93 = memref.load %arg3[%92] : memref<40xi32, #tpu.memory_space<smem>>
      %c32_i32 = arith.constant 32 : i32
      %94 = arith.addi %c32_i32, %64 : i32
      %c0_i32_40 = arith.constant 0 : i32
      %c0_i32_41 = arith.constant 0 : i32
      %95 = tpu.memref_slice %arg4[%67, %c0_i32_41] : memref<64x32xf32, #tpu.memory_space<any>> -> memref<1x32xf32, #tpu.memory_space<any>>
      %c0_i32_42 = arith.constant 0 : i32
      %96 = tpu.memref_slice %arg7[%64, %c0_i32_42] : memref<8x32xf32, #tpu.memory_space<vmem>> -> memref<1x32xf32, #tpu.memory_space<vmem>>
      %97 = tpu.memref_slice %arg10[%c0_i32_40] : memref<1x!tpu.dma_semaphore, #tpu.memory_space<semaphore_mem>> -> memref<1x!tpu.dma_semaphore, #tpu.memory_space<semaphore_mem>>
      %98 = tpu.memref_squeeze %97 : memref<1x!tpu.dma_semaphore, #tpu.memory_space<semaphore_mem>> -> memref<!tpu.dma_semaphore, #tpu.memory_space<semaphore_mem>>
      tpu.wait_dma2 semaphore(%98 : memref<!tpu.dma_semaphore, #tpu.memory_space<semaphore_mem>>) src(%95 : memref<1x32xf32, #tpu.memory_space<any>>) dst(%96 : memref<1x32xf32, #tpu.memory_space<vmem>>)
      %c0_i32_43 = arith.constant 0 : i32
      %c0_i32_44 = arith.constant 0 : i32
      %99 = tpu.memref_slice %arg5[%69, %c0_i32_44] : memref<64x32xf32, #tpu.memory_space<any>> -> memref<1x32xf32, #tpu.memory_space<any>>
      %c0_i32_45 = arith.constant 0 : i32
      %100 = tpu.memref_slice %arg8[%64, %c0_i32_45] : memref<8x32xf32, #tpu.memory_space<vmem>> -> memref<1x32xf32, #tpu.memory_space<vmem>>
      %101 = tpu.memref_slice %arg10[%c0_i32_43] : memref<1x!tpu.dma_semaphore, #tpu.memory_space<semaphore_mem>> -> memref<1x!tpu.dma_semaphore, #tpu.memory_space<semaphore_mem>>
      %102 = tpu.memref_squeeze %101 : memref<1x!tpu.dma_semaphore, #tpu.memory_space<semaphore_mem>> -> memref<!tpu.dma_semaphore, #tpu.memory_space<semaphore_mem>>
      tpu.wait_dma2 semaphore(%102 : memref<!tpu.dma_semaphore, #tpu.memory_space<semaphore_mem>>) src(%99 : memref<1x32xf32, #tpu.memory_space<any>>) dst(%100 : memref<1x32xf32, #tpu.memory_space<vmem>>)
      %c0_i32_46 = arith.constant 0 : i32
      %c0_i32_47 = arith.constant 0 : i32
      %103 = tpu.memref_slice %arg5[%73, %c0_i32_47] : memref<64x32xf32, #tpu.memory_space<any>> -> memref<1x32xf32, #tpu.memory_space<any>>
      %c0_i32_48 = arith.constant 0 : i32
      %104 = tpu.memref_slice %arg9[%74, %c0_i32_48] : memref<40x32xf32, #tpu.memory_space<vmem>> -> memref<1x32xf32, #tpu.memory_space<vmem>>
      %105 = tpu.memref_slice %arg10[%c0_i32_46] : memref<1x!tpu.dma_semaphore, #tpu.memory_space<semaphore_mem>> -> memref<1x!tpu.dma_semaphore, #tpu.memory_space<semaphore_mem>>
      %106 = tpu.memref_squeeze %105 : memref<1x!tpu.dma_semaphore, #tpu.memory_space<semaphore_mem>> -> memref<!tpu.dma_semaphore, #tpu.memory_space<semaphore_mem>>
      tpu.wait_dma2 semaphore(%106 : memref<!tpu.dma_semaphore, #tpu.memory_space<semaphore_mem>>) src(%103 : memref<1x32xf32, #tpu.memory_space<any>>) dst(%104 : memref<1x32xf32, #tpu.memory_space<vmem>>)
      %c0_i32_49 = arith.constant 0 : i32
      %c0_i32_50 = arith.constant 0 : i32
      %107 = tpu.memref_slice %arg5[%78, %c0_i32_50] : memref<64x32xf32, #tpu.memory_space<any>> -> memref<1x32xf32, #tpu.memory_space<any>>
      %c0_i32_51 = arith.constant 0 : i32
      %108 = tpu.memref_slice %arg9[%79, %c0_i32_51] : memref<40x32xf32, #tpu.memory_space<vmem>> -> memref<1x32xf32, #tpu.memory_space<vmem>>
      %109 = tpu.memref_slice %arg10[%c0_i32_49] : memref<1x!tpu.dma_semaphore, #tpu.memory_space<semaphore_mem>> -> memref<1x!tpu.dma_semaphore, #tpu.memory_space<semaphore_mem>>
      %110 = tpu.memref_squeeze %109 : memref<1x!tpu.dma_semaphore, #tpu.memory_space<semaphore_mem>> -> memref<!tpu.dma_semaphore, #tpu.memory_space<semaphore_mem>>
      tpu.wait_dma2 semaphore(%110 : memref<!tpu.dma_semaphore, #tpu.memory_space<semaphore_mem>>) src(%107 : memref<1x32xf32, #tpu.memory_space<any>>) dst(%108 : memref<1x32xf32, #tpu.memory_space<vmem>>)
      %c0_i32_52 = arith.constant 0 : i32
      %c0_i32_53 = arith.constant 0 : i32
      %111 = tpu.memref_slice %arg5[%83, %c0_i32_53] : memref<64x32xf32, #tpu.memory_space<any>> -> memref<1x32xf32, #tpu.memory_space<any>>
      %c0_i32_54 = arith.constant 0 : i32
      %112 = tpu.memref_slice %arg9[%84, %c0_i32_54] : memref<40x32xf32, #tpu.memory_space<vmem>> -> memref<1x32xf32, #tpu.memory_space<vmem>>
      %113 = tpu.memref_slice %arg10[%c0_i32_52] : memref<1x!tpu.dma_semaphore, #tpu.memory_space<semaphore_mem>> -> memref<1x!tpu.dma_semaphore, #tpu.memory_space<semaphore_mem>>
      %114 = tpu.memref_squeeze %113 : memref<1x!tpu.dma_semaphore, #tpu.memory_space<semaphore_mem>> -> memref<!tpu.dma_semaphore, #tpu.memory_space<semaphore_mem>>
      tpu.wait_dma2 semaphore(%114 : memref<!tpu.dma_semaphore, #tpu.memory_space<semaphore_mem>>) src(%111 : memref<1x32xf32, #tpu.memory_space<any>>) dst(%112 : memref<1x32xf32, #tpu.memory_space<vmem>>)
      %c0_i32_55 = arith.constant 0 : i32
      %c0_i32_56 = arith.constant 0 : i32
      %115 = tpu.memref_slice %arg5[%88, %c0_i32_56] : memref<64x32xf32, #tpu.memory_space<any>> -> memref<1x32xf32, #tpu.memory_space<any>>
      %c0_i32_57 = arith.constant 0 : i32
      %116 = tpu.memref_slice %arg9[%89, %c0_i32_57] : memref<40x32xf32, #tpu.memory_space<vmem>> -> memref<1x32xf32, #tpu.memory_space<vmem>>
      %117 = tpu.memref_slice %arg10[%c0_i32_55] : memref<1x!tpu.dma_semaphore, #tpu.memory_space<semaphore_mem>> -> memref<1x!tpu.dma_semaphore, #tpu.memory_space<semaphore_mem>>
      %118 = tpu.memref_squeeze %117 : memref<1x!tpu.dma_semaphore, #tpu.memory_space<semaphore_mem>> -> memref<!tpu.dma_semaphore, #tpu.memory_space<semaphore_mem>>
      tpu.wait_dma2 semaphore(%118 : memref<!tpu.dma_semaphore, #tpu.memory_space<semaphore_mem>>) src(%115 : memref<1x32xf32, #tpu.memory_space<any>>) dst(%116 : memref<1x32xf32, #tpu.memory_space<vmem>>)
      %c0_i32_58 = arith.constant 0 : i32
      %c0_i32_59 = arith.constant 0 : i32
      %119 = tpu.memref_slice %arg5[%93, %c0_i32_59] : memref<64x32xf32, #tpu.memory_space<any>> -> memref<1x32xf32, #tpu.memory_space<any>>
      %c0_i32_60 = arith.constant 0 : i32
      %120 = tpu.memref_slice %arg9[%94, %c0_i32_60] : memref<40x32xf32, #tpu.memory_space<vmem>> -> memref<1x32xf32, #tpu.memory_space<vmem>>
      %121 = tpu.memref_slice %arg10[%c0_i32_58] : memref<1x!tpu.dma_semaphore, #tpu.memory_space<semaphore_mem>> -> memref<1x!tpu.dma_semaphore, #tpu.memory_space<semaphore_mem>>
      %122 = tpu.memref_squeeze %121 : memref<1x!tpu.dma_semaphore, #tpu.memory_space<semaphore_mem>> -> memref<!tpu.dma_semaphore, #tpu.memory_space<semaphore_mem>>
      tpu.wait_dma2 semaphore(%122 : memref<!tpu.dma_semaphore, #tpu.memory_space<semaphore_mem>>) src(%119 : memref<1x32xf32, #tpu.memory_space<any>>) dst(%120 : memref<1x32xf32, #tpu.memory_space<vmem>>)
    }
    %c8_i32_5 = arith.constant 8 : i32
    %c0 = arith.constant 0 : index
    %c0_6 = arith.constant 0 : index
    %3 = vector.load %arg7[%c0, %c0_6] : memref<8x32xf32, #tpu.memory_space<vmem>>, vector<8x32xf32>
    %c0_7 = arith.constant 0 : index
    %c0_8 = arith.constant 0 : index
    %4 = vector.load %arg8[%c0_7, %c0_8] : memref<8x32xf32, #tpu.memory_space<vmem>>, vector<8x32xf32>
    %c0_9 = arith.constant 0 : index
    %c0_10 = arith.constant 0 : index
    %5 = vector.load %arg9[%c0_9, %c0_10] : memref<40x32xf32, #tpu.memory_space<vmem>>, vector<8x32xf32>
    %c8 = arith.constant 8 : index
    %c0_11 = arith.constant 0 : index
    %6 = vector.load %arg9[%c8, %c0_11] : memref<40x32xf32, #tpu.memory_space<vmem>>, vector<8x32xf32>
    %7 = arith.addf %5, %6 : vector<8x32xf32>
    %c16 = arith.constant 16 : index
    %c0_12 = arith.constant 0 : index
    %8 = vector.load %arg9[%c16, %c0_12] : memref<40x32xf32, #tpu.memory_space<vmem>>, vector<8x32xf32>
    %9 = arith.addf %7, %8 : vector<8x32xf32>
    %c24 = arith.constant 24 : index
    %c0_13 = arith.constant 0 : index
    %10 = vector.load %arg9[%c24, %c0_13] : memref<40x32xf32, #tpu.memory_space<vmem>>, vector<8x32xf32>
    %11 = arith.addf %9, %10 : vector<8x32xf32>
    %c32 = arith.constant 32 : index
    %c0_14 = arith.constant 0 : index
    %12 = vector.load %arg9[%c32, %c0_14] : memref<40x32xf32, #tpu.memory_space<vmem>>, vector<8x32xf32>
    %13 = arith.addf %11, %12 : vector<8x32xf32>
    %14 = arith.mulf %3, %4 : vector<8x32xf32>
    %cst = arith.constant dense<0.000000e+00> : vector<8xf32>
    %15 = vector.multi_reduction <add>, %14, %cst [1] : vector<8x32xf32> to vector<8xf32>
    %16 = vector.shape_cast %15 : vector<8xf32> to vector<8x1xf32>
    %17 = arith.mulf %3, %13 : vector<8x32xf32>
    %cst_15 = arith.constant dense<0.000000e+00> : vector<8xf32>
    %18 = vector.multi_reduction <add>, %17, %cst_15 [1] : vector<8x32xf32> to vector<8xf32>
    %19 = vector.shape_cast %18 : vector<8xf32> to vector<8x1xf32>
    %cst_16 = arith.constant 0.000000e+00 : f32
    %20 = vector.broadcast %cst_16 : f32 to vector<8x1xf32>
    %21 = arith.minimumf %16, %20 : vector<8x1xf32>
    %22 = math.absf %16 : vector<8x1xf32>
    %cst_17 = arith.constant 0.000000e+00 : f32
    %23 = vector.broadcast %cst_17 : f32 to vector<8x1xf32>
    %24 = arith.subf %23, %22 : vector<8x1xf32>
    %25 = math.exp %24 : vector<8x1xf32>
    %26 = math.log1p %25 : vector<8x1xf32>
    %27 = arith.subf %21, %26 : vector<8x1xf32>
    %cst_18 = arith.constant 0.000000e+00 : f32
    %28 = vector.broadcast %cst_18 : f32 to vector<8x1xf32>
    %29 = arith.subf %28, %19 : vector<8x1xf32>
    %cst_19 = arith.constant 0.000000e+00 : f32
    %30 = vector.broadcast %cst_19 : f32 to vector<8x1xf32>
    %31 = arith.minimumf %29, %30 : vector<8x1xf32>
    %32 = math.absf %29 : vector<8x1xf32>
    %cst_20 = arith.constant 0.000000e+00 : f32
    %33 = vector.broadcast %cst_20 : f32 to vector<8x1xf32>
    %34 = arith.subf %33, %32 : vector<8x1xf32>
    %35 = math.exp %34 : vector<8x1xf32>
    %36 = math.log1p %35 : vector<8x1xf32>
    %37 = arith.subf %31, %36 : vector<8x1xf32>
    %38 = arith.addf %27, %37 : vector<8x1xf32>
    %cst_21 = arith.constant 0.000000e+00 : f32
    %39 = vector.broadcast %cst_21 : f32 to vector<8x1xf32>
    %40 = arith.subf %39, %38 : vector<8x1xf32>
    %41 = tpu.iota {dimensions = array<i32: 0>} : vector<8x1xi32>
    %42 = vector.broadcast %0 : i32 to vector<8x1xi32>
    %43 = arith.addi %42, %41 : vector<8x1xi32>
    %c8_i32_22 = arith.constant 8 : i32
    %44 = vector.broadcast %c8_i32_22 : i32 to vector<8x1xi32>
    %45 = arith.cmpi slt, %43, %44 : vector<8x1xi32>
    %cst_23 = arith.constant 0.000000e+00 : f32
    %46 = vector.broadcast %cst_23 : f32 to vector<8x1xf32>
    %47 = arith.select %45, %40, %46 : vector<8x1xi1>, vector<8x1xf32>
    %48 = vector.shape_cast %47 : vector<8x1xf32> to vector<1x8x1xf32>
    %cst_24 = arith.constant dense<0.000000e+00> : vector<1xf32>
    %49 = vector.multi_reduction <add>, %48, %cst_24 [1, 2] : vector<1x8x1xf32> to vector<1xf32>
    %50 = vector.shape_cast %49 : vector<1xf32> to vector<1x1x1xf32>
    %51 = vector.extract %50[0, 0, 0] : f32 from vector<1x1x1xf32>
    %52 = tpu.iota {dimensions = array<i32: 0>} : vector<8x128xi32>
    %53 = tpu.iota {dimensions = array<i32: 1>} : vector<8x128xi32>
    %c0_i32_25 = arith.constant 0 : i32
    %54 = vector.broadcast %c0_i32_25 : i32 to vector<8x128xi32>
    %55 = arith.cmpi eq, %52, %54 : vector<8x128xi32>
    %c0_i32_26 = arith.constant 0 : i32
    %56 = vector.broadcast %c0_i32_26 : i32 to vector<8x128xi32>
    %57 = arith.cmpi eq, %53, %56 : vector<8x128xi32>
    %58 = arith.andi %55, %57 : vector<8x128xi1>
    %cst_27 = arith.constant 0.000000e+00 : f32
    %59 = vector.broadcast %51 : f32 to vector<8x128xf32>
    %60 = vector.broadcast %cst_27 : f32 to vector<8x128xf32>
    %61 = arith.select %58, %59, %60 : vector<8x128xi1>, vector<8x128xf32>
    %c0_28 = arith.constant 0 : index
    %c0_29 = arith.constant 0 : index
    %62 = vector.load %arg6[%c0_28, %c0_29] : memref<8x128xf32, #tpu.memory_space<vmem>>, vector<8x128xf32>
    tpu.vector_store %arg6[%c0_28, %c0_29], %61 {strides = array<i32>} : memref<8x128xf32, #tpu.memory_space<vmem>>, vector<8x128xf32>,
    return
  }
  func.func @transform_2(%arg0: i32, %arg1: memref<8xi32, #tpu.memory_space<smem>>, %arg2: memref<8xi32, #tpu.memory_space<smem>>, %arg3: memref<40xi32, #tpu.memory_space<smem>>) -> (i32, i32) {
    %c0_i32 = arith.constant 0 : i32
    %c0_i32_0 = arith.constant 0 : i32
    return %arg0, %c0_i32 : i32, i32
  }
}

</mosaic_0001>

<bundles_post_ra>
// kernel: sgns_forward.1
= control target key start
LH: loop header
LB: loop body
LE: loop exit
PB: predicated region body
PF: predicated region fallthrough
CT: control target
= control target key end

     0   :  { %s785_s0 = inlined_call_operand.vmem [shape: s32[8], index: 0, kind: input, shape index: {}]   ;;  %s786_s3 = inlined_call_operand.vmem [shape: f32[64,32], index: 3, kind: input, shape index: {}]   ;;  %s787_s4 = inlined_call_operand.vmem [shape: f32[64,32], index: 4, kind: input, shape index: {}]   ;;  %s788_s5 = inlined_call_operand.vmem [shape: f32[8,128], index: 5, kind: output, shape index: {}]   ;;  %s789_s1 = inlined_call_operand.vmem [shape: s32[8], index: 1, kind: input, shape index: {}]   ;;  %s790_s2 = inlined_call_operand.vmem [shape: s32[40], index: 2, kind: input, shape index: {}]  }
   0x1   :  { %s10_s20 = sshll.u32 %s785_s0, 4  ;;  %s14_s23 = sshll.u32 %s789_s1, 4  ;;  %s11_s20 = int_to_ptr.vmem [resolvable:$true] %s10_s20  ;;  %s15_s23 = int_to_ptr.vmem [resolvable:$true] %s14_s23 }
   0x2   :  { %s646_s24 = scalar_lea.vmem %s11_s20, 16  ;;  %p651_p1 = scmp.lt.s32.totalorder %s11_s20, %s11_s20 }
   0x3   :  { %p647_p0 = scmp.ne.s32.totalorder %s11_s20, %s646_s24  ;;  %p652_p2 = scmp.lt.s32.totalorder %s646_s24, %s646_s24 }
   0x5   :  { %p653_p3 = por %p652_p2, %p651_p1 }
   0x7   :  { %p654_p4 = pnand %p653_p3, %p647_p0 }
   0x9   :  { %657 = shalt.err (!%p654_p4)  }
   0xa   :  { %s702_s25 = smov [#allocation7]   ;;  %s658_s26 = scalar_lea.vmem %s15_s23, 16 }
   0xb   :  { %13 = dma.vmem_to_smem %s11_s20, 16, %s702_s25, [#allocation6] }
   0xc   :  { %p659_p5 = scmp.ne.s32.totalorder %s15_s23, %s658_s26  ;;  %p663_p6 = scmp.lt.s32.totalorder %s15_s23, %s15_s23 }
   0xd   :  { %p664_p7 = scmp.lt.s32.totalorder %s658_s26, %s658_s26 }
   0xf   :  { %p665_p8 = por %p664_p7, %p663_p6 }
  0x11   :  { %p666_p9 = pnand %p665_p8, %p659_p5 }
  0x13   :  { %669 = shalt.err (!%p666_p9)  }
  0x14   :  { %s703_s0 = smov [#allocation8]   ;;  %s18_s28 = sshll.u32 %s790_s2, 4  ;;  %s19_s28 = int_to_ptr.vmem [resolvable:$true] %s18_s28 }
  0x15   :  { %17 = dma.vmem_to_smem %s15_s23, 16, %s703_s0, [#allocation6] }
  0x16   :  { %s670_s29 = scalar_lea.vmem %s19_s28, 16  ;;  %p675_p11 = scmp.lt.s32.totalorder %s19_s28, %s19_s28 }
  0x17   :  { %p671_p10 = scmp.ne.s32.totalorder %s19_s28, %s670_s29  ;;  %p676_p12 = scmp.lt.s32.totalorder %s670_s29, %s670_s29 }
  0x19   :  { %p677_p13 = por %p676_p12, %p675_p11 }
  0x1b   :  { %p678_p0 = pnand %p677_p13, %p671_p10 }
  0x1d   :  { %681 = shalt.err (!%p678_p0)  }
  0x1e   :  { %s704_s30 = smov [#allocation9]  }
  0x1f   :  { %21 = dma.vmem_to_smem %s19_s28, 16, %s704_s30, [#allocation6] }
  0x20   :  { %690 = dma.done.wait [#allocation6], 48 }
  0x21   :  { %691 = vsyncadd [#allocation6], 4294967248 }
  0x22   :  { %23 = sfence }
  0x23   :  { %s744_s6 = smov 0  }
  0x24 LB: > { %s32_s2 = sld [smem:[#allocation7 + %s696_s6]]  ;;  %s34_s7 = smul.u32 5, %s696_s6  ;;  %s696_s6 = sphi %s744_s6, %s30_s6  }
  0x25   : > { %s33_s8 = sld [smem:[#allocation8 + %s696_s6]]  ;;  %s49_s21 = scalar_lea.vmem [#allocation2], %s696_s6 }
  0x26   : > { %s35_s9 = sld [smem:[#allocation9 + %s34_s7]]  ;;  %s36_s10 = sadd.s32 1, %s34_s7 }
  0x27   : > { %s37_s11 = sld [smem:[#allocation9 + %s36_s10]]  ;;  %s39_s12 = sadd.s32 2, %s34_s7 }
  0x28   : > { %s40_s13 = sld [smem:[#allocation9 + %s39_s12]]  ;;  %s42_s14 = sadd.s32 3, %s34_s7 }
  0x29   : > { %s43_s15 = sld [smem:[#allocation9 + %s42_s14]]  ;;  %s45_s16 = sadd.s32 4, %s34_s7 }
  0x2a   : > { %s752_s17 = sld [smem:[#allocation9 + %s45_s16]]  ;;  %s48_s20 = scalar_lea.vmem %s786_s3, %s32_s2 }
  0x2b   : > { %v68_v0 = vld [vmem:[%s48_s20] sm:$0x1] }
  0x2c   : > { %69 = vst [vmem:[%s49_s21] sm:$0x1] %v68_v0 }
  0x2d   : > { %95 = vsyncadd [#allocation5], 16  ;;  %s96_s24 = scalar_lea.vmem %s787_s4, %s33_s8  ;;  %s97_s25 = scalar_lea.vmem [#allocation3], %s696_s6 }
  0x2e   : > { %v116_v1 = vld [vmem:[%s96_s24] sm:$0x1] }
  0x2f   : > { %117 = vst [vmem:[%s97_s25] sm:$0x1] %v116_v1 }
  0x30   : > { %143 = vsyncadd [#allocation5], 16  ;;  %s144_s1 = scalar_lea.vmem %s787_s4, %s35_s9  ;;  %s145_s27 = scalar_lea.vmem [#allocation4], %s696_s6 }
  0x31   : > { %v164_v2 = vld [vmem:[%s144_s1] sm:$0x1] }
  0x32   : > { %165 = vst [vmem:[%s145_s27] sm:$0x1] %v164_v2 }
  0x33   : > { %191 = vsyncadd [#allocation5], 16  ;;  %s192_s30 = scalar_lea.vmem %s787_s4, %s37_s11 }
  0x34   : > { %v212_v3 = vld [vmem:[%s192_s30] sm:$0x1] }
  0x35   : > { %609 = vst [vmem:[%s145_s27 + $0x8] sm:$0x1] %v212_v3 }
  0x36   : > { %239 = vsyncadd [#allocation5], 16  ;;  %s240_s8 = scalar_lea.vmem %s787_s4, %s40_s13 }
  0x37   : > { %v260_v4 = vld [vmem:[%s240_s8] sm:$0x1] }
  0x38   : > { %611 = vst [vmem:[%s145_s27 + $0x10] sm:$0x1] %v260_v4 }
  0x39   : > { %287 = vsyncadd [#allocation5], 16  ;;  %s288_s12 = scalar_lea.vmem %s787_s4, %s43_s15 }
  0x3a   : > { %v308_v5 = vld [vmem:[%s288_s12] sm:$0x1] }
  0x3b   : > { %613 = vst [vmem:[%s145_s27 + $0x18] sm:$0x1] %v308_v5 }
  0x3c   : > { %335 = vsyncadd [#allocation5], 16  ;;  %s336_s16 = scalar_lea.vmem %s787_s4, %s752_s17 }
  0x3d   : > { %v356_v6 = vld [vmem:[%s336_s16] sm:$0x1] }
  0x3e   : > { %615 = vst [vmem:[%s145_s27 + $0x20] sm:$0x1] %v356_v6 }
  0x3f   : > { %383 = vsyncadd [#allocation5], 16  ;;  %s30_s6 = sadd.s32 1, %s696_s6  }
  0x40   : > { %p27_p1 = scmp.ge.s32.totalorder %s30_s6, 8  }
  0x41   :  { %s698_s13 = smov (%p27_p1), 0  }
  0x42   :  { %29 = sbr.rel (!%p27_p1) target bundleno = 36 (0x24), region = 328 }
  0x47 LB: > { %692 = dma.done.wait [#allocation5], 112  ;;  %s700_s13 = sphi %s698_s13, %s389_s13  }
  0x48   : > { %693 = vsyncadd [#allocation5], 4294967184  ;;  %s389_s13 = sadd.s32 1, %s700_s13  }
  0x49   : > { %p386_p2 = scmp.ge.s32.totalorder %s389_s13, 8  }
  0x4a   :  { %v420_v7 = vld [vmem:[#allocation4] sm:$0xff] (%p386_p2)  ;;  %v421_v8 = vld [vmem:[#allocation4 + $0x8] sm:$0xff] (%p386_p2)  ;;  %v423_v10 = vld [vmem:[#allocation4 + $0x10] sm:$0xff] (%p386_p2)  ;;  %vm430_vm0 = vcmask (%p386_p2), 261120   ;;  %vm477_vm3 = vcmask (%p386_p2), 7168   ;;  %v471_v63 = vlaneseq (%p386_p2) }
  0x4b   :  { %388 = sbr.rel (!%p386_p2) target bundleno = 71 (0x47), region = 339  ;;  %v422_v9 = vadd.f32 (%p386_p2), %v421_v8, %v420_v7  ;;  %v425_v11 = vld [vmem:[#allocation4 + $0x18] sm:$0xff] (%p386_p2)  ;;  %v427_v13 = vld [vmem:[#allocation4 + $0x20] sm:$0xff] (%p386_p2)  ;;  %v418_v15 = vld [vmem:[#allocation2] sm:$0xff] (%p386_p2) }
  0x4c   :  { %v419_v16 = vld [vmem:[#allocation3] sm:$0xff] (%p386_p2)  ;;  %v472_v0 = vshrl.u32 (%p386_p2), %v471_v63, 7  ;;  %v489_v1 = vand.u32 (%p386_p2), 127, %v471_v63 }
  0x4d   :  { %v424_v12 = vadd.f32 (%p386_p2), %v423_v10, %v422_v9  ;;  %v429_v19 = vmul.f32 (%p386_p2), %v419_v16, %v418_v15 }
  0x4e   :  { %vm490_vm4 = vcmp.eq.s32.totalorder (%p386_p2), %v472_v0, 0  ;;  %vm491_vm5 = vcmp.eq.s32.totalorder (%p386_p2), %v489_v1, 0 }
  0x4f   :  { %v426_v14 = vadd.f32 (%p386_p2), %v425_v11, %v424_v12  ;;  %v431_v21 = vsel (%p386_p2), %vm430_vm0, %v429_v19, 0.0  ;;  %vm492_vm6 = vmand (%p386_p2), %vm490_vm4, %vm491_vm5 }
  0x51   :  { %v428_v17 = vadd.f32 %v427_v13, %v426_v14 }
  0x53   :  { %v434_v18 = vmul.f32 %v428_v17, %v418_v15 }
  0x55   :  { %v435_v20 = vsel %vm430_vm0, %v434_v18, 0.0 }
  0x56   :  { %436 = vadd.xlane.f32.xlu0 %v435_v20 }
  0x5a   :  { %432 = vadd.xlane.f32.xlu0 %v431_v21 }
  0xdf   :  { %v437_v22 = vpop.xlane.xlu0 %436 }
  0xe0   :  { %v453_v23 = vsub.f32 0.0, %v437_v22 }
  0xe2   :  { %v455_v24 = vand.u32 2147483647, %v453_v23  ;;  %v454_v48 = vmin.f32 %v453_v23, 0.0 }
  0xe3   :  { %v433_v25 = vpop.xlane.xlu0 %432 }
  0xe4   :  { %v456_v26 = vsub.f32 0.0, %v455_v24  ;;  %v439_v27 = vand.u32 2147483647, %v433_v25  ;;  %v438_v49 = vmin.f32 %v433_v25, 0.0 }
  0xe6   :  { %v457_v28 = vmul.f32 1.442695, %v456_v26  ;;  %v440_v29 = vsub.f32 0.0, %v439_v27 }
  0xe8   :  { %638 = vpow2.f32 %v457_v28  ;;  %v441_v30 = vmul.f32 1.442695, %v440_v29 }
  0xea   :  { %640 = vpow2.f32 %v441_v30 }
  0xf5   :  { %v639_v31 = vpop.eup %638 }
  0xf6   :  { %v459_v32 = vadd.f32 1.0, %v639_v31  ;;  %v462_v35 = vmul.f32 -0.5, %v639_v31  ;;  %v465_v38 = vand.u32 2147483647, %v639_v31 }
  0xf7   :  { %v641_v33 = vpop.eup %640 }
  0xf8   :  { %v443_v34 = vadd.f32 1.0, %v641_v33  ;;  %642 = vlog2.f32 %v459_v32  ;;  %v446_v36 = vmul.f32 -0.5, %v641_v33  ;;  %v463_v37 = vadd.f32 1.0, %v462_v35 }
  0xf9   :  { %v449_v41 = vand.u32 2147483647, %v641_v33  ;;  %vm466_vm1 = vcmp.lt.f32.partialorder %v465_v38, 0.0004427343 }
  0xfa   :  { %644 = vlog2.f32 %v443_v34  ;;  %v447_v39 = vadd.f32 1.0, %v446_v36  ;;  %v464_v43 = vmul.f32 %v639_v31, %v463_v37 }
  0xfb   :  { %vm450_vm2 = vcmp.lt.f32.partialorder %v449_v41, 0.0004427343 }
  0xfc   :  { %v448_v46 = vmul.f32 %v641_v33, %v447_v39 }
 0x105   :  { %v643_v40 = vpop.eup %642 }
 0x106   :  { %v461_v42 = vmul.f32 0.6931472, %v643_v40 }
 0x107   :  { %v645_v44 = vpop.eup %644 }
 0x108   :  { %v445_v45 = vmul.f32 0.6931472, %v645_v44  ;;  %v467_v47 = vsel %vm466_vm1, %v464_v43, %v461_v42 }
 0x109   :  { %v468_v52 = vsub.f32 %v454_v48, %v467_v47 }
 0x10a   :  { %v451_v50 = vsel %vm450_vm2, %v448_v46, %v445_v45 }
 0x10b   :  { %v452_v51 = vsub.f32 %v438_v49, %v451_v50 }
 0x10d   :  { %v469_v53 = vadd.f32 %v468_v52, %v452_v51 }
 0x10f   :  { %v470_v54 = vsub.f32 0.0, %v469_v53 }
 0x111   :  { %v478_v55 = vsel %vm477_vm3, %v470_v54, 0.0 }
 0x112   :  { %479 = vadd.xlane.f32.xlu1 %v478_v55 }
 0x19b   :  { %v480_v56 = vpop.xlane.xlu1 %479 }
 0x19c   :  { %v481_v57 = vrot.slane %v480_v56, 4 }
 0x19e   :  { %v482_v58 = vadd.f32 %v481_v57, %v480_v56 }
 0x1a0   :  { %v483_v59 = vrot.slane %v482_v58, 2 }
 0x1a2   :  { %v484_v60 = vadd.f32 %v483_v59, %v482_v58 }
 0x1a4   :  { %v485_v61 = vrot.slane %v484_v60, 1 }
 0x1a6   :  { %v486_v62 = vadd.f32 %v485_v61, %v484_v60 }
 0x1a8   :  { %617 = vpush %v486_v62 }
 0x1d9   :  { %s618_s3 = spop %617 }
 0x1da   :  { %v493_v2 = vstv %s618_s3 }
 0x1db   :  { %v494_v3 = vsel %vm492_vm6, %v493_v2, 0.0 }
 0x1dc   :  { %495 = vst [vmem:[%s788_s5] sm:$0xff] %v494_v3 }
 0x1dd   :  { %500 = vsyncmov [#allocation5] }
 0x1e0   :  { %s501_s15 = vpop.sfrf %500 }
 0x1e1   :  { %p616_p3 = scmp.ne.s32.totalorder %s501_s15, 0 }
 0x1e3   :  { %505 = shalt.err (%p616_p3)  }

</bundles_post_ra>
